<compile_context>
chip_gen: v7x
topology: tpu7x:2x2x1
jax: 0.10.0
libtpu: 0.0.40
codegen_flags: <defaults>
</compile_context>

<pallas_src>
import functools

import jax
import jax.numpy as jnp
from jax.experimental import pallas as pl
from jax.experimental.pallas import tpu as pltpu

_LANE = 128


def _net_kernel(x_ref, w1_ref, b1_ref, w2_ref, b2_ref, o_ref):
    # x_ref : [5, TB]  bf16 (batch on lanes)
    # w1_ref: [20, 5]  bf16 (torch [out, in] layout -> no transpose needed)
    # b1_ref: [20, 1]  f32
    # w2_ref: [20, 1]  f32
    # b2_ref: [1, 1]   f32
    # o_ref : [1, TB]  f32
    h = jnp.dot(w1_ref[...], x_ref[...],
                preferred_element_type=jnp.float32)            # [20, TB]  (MXU)
    z = h + b1_ref[...]                                        # bias bcast over lanes
    h = 0.5 * jnp.tanh(0.5 * z) + 0.5                          # sigmoid, single EUP op
    # Second layer on VPU/XLU: y[0,:] = sum_k w2[k] * h[k,:]
    y = jnp.sum(h * w2_ref[...], axis=0, keepdims=True)        # [1, TB]
    o_ref[...] = y + b2_ref[...]


def net_forward_fm(xt, w1, b1, w2, b2, *, tb=32768):
    """Fast path: feature-major xt [5, B] -> [1, B] float32.

    Weights in torch layout: w1 [20, 5], b1 [20], w2 [1, 20], b2 [1]."""
    in_dim, B = xt.shape
    hid = w1.shape[0]

    # Pad B only to a lane multiple; pick the grid from the requested tile and
    # rebalance the tile over that grid so padded-lane waste is < 128 * grid.
    Bp = pl.cdiv(B, _LANE) * _LANE
    tb = max(_LANE, min((tb // _LANE) * _LANE, Bp))
    grid = pl.cdiv(Bp, tb)
    tb = pl.cdiv(pl.cdiv(Bp, grid), _LANE) * _LANE
    Bt = grid * tb

    xb = xt.astype(jnp.bfloat16)                               # bf16 boundary cast
    if Bt != B:
        xb = jnp.pad(xb, ((0, 0), (0, Bt - B)))

    b1c = b1.reshape(hid, 1).astype(jnp.float32)               # [20, 1]
    w2c = w2.reshape(hid, 1).astype(jnp.float32)               # [1, 20] -> [20, 1]
    b2c = b2.reshape(1, 1).astype(jnp.float32)                 # [1, 1]

    yt = pl.pallas_call(
        _net_kernel,
        out_shape=jax.ShapeDtypeStruct((1, Bt), jnp.float32),
        grid_spec=pl.GridSpec(
            grid=(grid,),
            in_specs=[
                pl.BlockSpec((in_dim, tb), lambda i: (0, i)),   # x batch tile
                pl.BlockSpec((hid, in_dim), lambda i: (0, 0)),  # W1 resident
                pl.BlockSpec((hid, 1), lambda i: (0, 0)),       # b1 resident
                pl.BlockSpec((hid, 1), lambda i: (0, 0)),       # W2 resident
                pl.BlockSpec((1, 1), lambda i: (0, 0)),         # b2 resident
            ],
            out_specs=pl.BlockSpec((1, tb), lambda i: (0, i)),  # lane-dense output
        ),
        compiler_params=pltpu.CompilerParams(
            dimension_semantics=("parallel",),                  # megacore on v7x
            vmem_limit_bytes=48 * 1024 * 1024,                  # < v7x 64 MiB physical
        ),
    )(xb, w1.astype(jnp.bfloat16), b1c, w2c, b2c)

    return yt[:, :B]


@functools.partial(jax.jit, static_argnames=("tb",))
def net_forward(x, w1, b1, w2, b2, *, tb=32768):
    """PyTorch-layout wrapper: x [B, 5] -> [B, 1].  jit so the cast +
    transpose + pad around the pallas_call fuse into one XLA copy."""
    return net_forward_fm(x.T, w1, b1, w2, b2, tb=tb).T


def init_params(key):
    # Deterministic init mimicking torch.nn.Linear's U(-1/sqrt(fan_in), ...),
    # in torch's [out, in] weight layout.
    k1, k2, k3, k4 = jax.random.split(key, 4)
    in1, hid, out = 5, 20, 1
    lim1 = 1.0 / jnp.sqrt(jnp.float32(in1))
    lim2 = 1.0 / jnp.sqrt(jnp.float32(hid))
    w1 = jax.random.uniform(k1, (hid, in1), jnp.float32, -lim1, lim1)
    b1 = jax.random.uniform(k2, (hid,), jnp.float32, -lim1, lim1)
    w2 = jax.random.uniform(k3, (out, hid), jnp.float32, -lim2, lim2)
    b2 = jax.random.uniform(k4, (out,), jnp.float32, -lim2, lim2)
    return w1, b1, w2, b2


if __name__ == "__main__":
    key = jax.random.PRNGKey(0)
    kx, kp, kx2 = jax.random.split(key, 3)
    w1, b1, w2, b2 = init_params(kp)

    def ref_fwd(x):
        # Reference with the same bf16 rounding of x / W1 as the kernel.
        xb = x.astype(jnp.bfloat16).astype(jnp.float32)
        w1b = w1.astype(jnp.bfloat16).astype(jnp.float32)
        return jax.nn.sigmoid(xb @ w1b.T + b1) @ w2.T + b2

    # Small primary shape consistent with the module (5 -> 20 -> 1 MLP).
    B = 8
    x = jax.random.normal(kx, (B, 5), jnp.float32)
    out = net_forward(x, w1, b1, w2, b2)
    jax.block_until_ready(out)
    assert out.shape == (B, 1)
    assert jnp.allclose(out, ref_fwd(x), atol=5e-3, rtol=5e-3)

    # Multi-tile grid + ragged-tail padding path (B not a tile multiple).
    B2 = 300
    x2 = jax.random.normal(kx2, (B2, 5), jnp.float32)
    out2 = net_forward(x2, w1, b1, w2, b2, tb=128)
    jax.block_until_ready(out2)
    assert out2.shape == (B2, 1)
    assert jnp.allclose(out2, ref_fwd(x2), atol=5e-3, rtol=5e-3)

    # Feature-major fast path (no wrapper transpose at all).
    out3 = net_forward_fm(x2.T, w1, b1, w2, b2, tb=256)
    jax.block_until_ready(out3)
    assert out3.shape == (1, B2)
    assert jnp.allclose(out3, out2.T, atol=1e-5, rtol=1e-5)

    print("KERNEL_OK")
</pallas_src>

<mosaic_0001>
module attributes {stable_mosaic.version = 11 : i64} {
  func.func @_net_kernel(%arg0: i32, %arg1: memref<5x128xbf16, #tpu.memory_space<vmem>>, %arg2: memref<20x5xbf16, #tpu.memory_space<vmem>>, %arg3: memref<20x1xf32, #tpu.memory_space<vmem>>, %arg4: memref<20x1xf32, #tpu.memory_space<vmem>>, %arg5: memref<1x1xf32, #tpu.memory_space<vmem>>, %arg6: memref<1x128xf32, #tpu.memory_space<vmem>>) attributes {dimension_semantics = [#tpu.dimension_semantics<parallel>], iteration_bounds = array<i64: 1>, scalar_prefetch = 0 : i64, scratch_operands = 0 : i64, tpu.core_type = #tpu.core_type<tc>, window_params = [{transform_indices = @transform_0, window_bounds = array<i64: 5, 128>}, {pipeline_mode = #tpu.pipeline_mode<synchronous>, transform_indices = @transform_1, window_bounds = array<i64: 20, 5>}, {pipeline_mode = #tpu.pipeline_mode<synchronous>, transform_indices = @transform_2, window_bounds = array<i64: 20, 1>}, {pipeline_mode = #tpu.pipeline_mode<synchronous>, transform_indices = @transform_3, window_bounds = array<i64: 20, 1>}, {pipeline_mode = #tpu.pipeline_mode<synchronous>, transform_indices = @transform_4, window_bounds = array<i64: 1, 1>}, {transform_indices = @transform_5, window_bounds = array<i64: 1, 128>}]} {
    %c0 = arith.constant 0 : index
    %c0_0 = arith.constant 0 : index
    %0 = vector.load %arg2[%c0, %c0_0] : memref<20x5xbf16, #tpu.memory_space<vmem>>, vector<20x5xbf16>
    %c0_1 = arith.constant 0 : index
    %c0_2 = arith.constant 0 : index
    %1 = vector.load %arg1[%c0_1, %c0_2] : memref<5x128xbf16, #tpu.memory_space<vmem>>, vector<5x128xbf16>
    %cst = arith.constant dense<0.000000e+00> : vector<20x128xf32>
    %2 = tpu.matmul %0, %1, %cst {dimension_numbers = #tpu.dot_dimension_numbers<[1], [0], [0], [1], [0, 0, 1, 1], [], []>} : vector<20x5xbf16>, vector<5x128xbf16>, vector<20x128xf32> -> vector<20x128xf32>
    %c0_3 = arith.constant 0 : index
    %c0_4 = arith.constant 0 : index
    %3 = vector.load %arg3[%c0_3, %c0_4] : memref<20x1xf32, #tpu.memory_space<vmem>>, vector<20x1xf32>
    %4 = vector.broadcast %3 : vector<20x1xf32> to vector<20x128xf32>
    %5 = arith.addf %2, %4 : vector<20x128xf32>
    %cst_5 = arith.constant 5.000000e-01 : f32
    %6 = vector.broadcast %cst_5 : f32 to vector<20x128xf32>
    %7 = arith.mulf %6, %5 : vector<20x128xf32>
    %8 = math.tanh %7 : vector<20x128xf32>
    %cst_6 = arith.constant 5.000000e-01 : f32
    %9 = vector.broadcast %cst_6 : f32 to vector<20x128xf32>
    %10 = arith.mulf %9, %8 : vector<20x128xf32>
    %cst_7 = arith.constant 5.000000e-01 : f32
    %11 = vector.broadcast %cst_7 : f32 to vector<20x128xf32>
    %12 = arith.addf %10, %11 : vector<20x128xf32>
    %c0_8 = arith.constant 0 : index
    %c0_9 = arith.constant 0 : index
    %13 = vector.load %arg4[%c0_8, %c0_9] : memref<20x1xf32, #tpu.memory_space<vmem>>, vector<20x1xf32>
    %14 = vector.broadcast %13 : vector<20x1xf32> to vector<20x128xf32>
    %15 = arith.mulf %12, %14 : vector<20x128xf32>
    %cst_10 = arith.constant dense<0.000000e+00> : vector<128xf32>
    %16 = vector.multi_reduction <add>, %15, %cst_10 [0] : vector<20x128xf32> to vector<128xf32>
    %17 = vector.shape_cast %16 : vector<128xf32> to vector<1x128xf32>
    %c0_11 = arith.constant 0 : index
    %c0_12 = arith.constant 0 : index
    %18 = vector.load %arg5[%c0_11, %c0_12] : memref<1x1xf32, #tpu.memory_space<vmem>>, vector<1x1xf32>
    %19 = vector.broadcast %18 : vector<1x1xf32> to vector<1x128xf32>
    %20 = arith.addf %17, %19 : vector<1x128xf32>
    %c0_13 = arith.constant 0 : index
    %c0_14 = arith.constant 0 : index
    %21 = vector.load %arg6[%c0_13, %c0_14] : memref<1x128xf32, #tpu.memory_space<vmem>>, vector<1x128xf32>
    tpu.vector_store %arg6[%c0_13, %c0_14], %20 {strides = array<i32>} : memref<1x128xf32, #tpu.memory_space<vmem>>, vector<1x128xf32>,
    return
  }
  func.func @transform_0(%arg0: i32) -> (i32, i32) {
    %c0_i32 = arith.constant 0 : i32
    %c0_i32_0 = arith.constant 0 : i32
    return %c0_i32, %arg0 : i32, i32
  }
  func.func @transform_1(%arg0: i32) -> (i32, i32) {
    %c0_i32 = arith.constant 0 : i32
    %c0_i32_0 = arith.constant 0 : i32
    %c0_i32_1 = arith.constant 0 : i32
    return %c0_i32, %c0_i32_0 : i32, i32
  }
  func.func @transform_2(%arg0: i32) -> (i32, i32) {
    %c0_i32 = arith.constant 0 : i32
    %c0_i32_0 = arith.constant 0 : i32
    %c0_i32_1 = arith.constant 0 : i32
    return %c0_i32, %c0_i32_0 : i32, i32
  }
  func.func @transform_3(%arg0: i32) -> (i32, i32) {
    %c0_i32 = arith.constant 0 : i32
    %c0_i32_0 = arith.constant 0 : i32
    %c0_i32_1 = arith.constant 0 : i32
    return %c0_i32, %c0_i32_0 : i32, i32
  }
  func.func @transform_4(%arg0: i32) -> (i32, i32) {
    %c0_i32 = arith.constant 0 : i32
    %c0_i32_0 = arith.constant 0 : i32
    %c0_i32_1 = arith.constant 0 : i32
    return %c0_i32, %c0_i32_0 : i32, i32
  }
  func.func @transform_5(%arg0: i32) -> (i32, i32) {
    %c0_i32 = arith.constant 0 : i32
    %c0_i32_0 = arith.constant 0 : i32
    return %c0_i32, %arg0 : i32, i32
  }
}

</mosaic_0001>

<bundles_post_ra>
// kernel: net_forward.1
= control target key start
LH: loop header
LB: loop body
LE: loop exit
PB: predicated region body
PF: predicated region fallthrough
CT: control target
= control target key end

     0   :  { %vm60_vm0 = vcmask 1041408   ;;  %vm61_vm1 = vcmask 1042432   ;;  %vm53_vm2 = vcmask 39936   ;;  %v199_v1 = vmov 65535   ;;  %s266_s0 = inlined_call_operand.vmem [shape: bf16[5,128], index: 0, kind: input, shape index: {}]   ;;  %s267_s1 = inlined_call_operand.vmem [shape: bf16[20,5], index: 1, kind: input, shape index: {}]   ;;  %s268_s2 = inlined_call_operand.vmem [shape: f32[20,1], index: 2, kind: input, shape index: {}]   ;;  %s269_s4 = inlined_call_operand.<no memory space> [shape: f32[1,1], index: 4, kind: input, shape index: {}]   ;;  %s270_s3 = inlined_call_operand.vmem [shape: f32[20,1], index: 3, kind: input, shape index: {}]   ;;  %s271_s5 = inlined_call_operand.vmem [shape: f32[1,128], index: 5, kind: output, shape index: {}]  }
   0x1   :  { %v26_v0 = vld [vmem:[%s266_s0] sm:$0x7]  ;;  %v62_v2 = vsel %vm60_vm0, 4294967295, %v199_v1  ;;  %v10_v4 = vstv %s269_s4  ;;  %v200_v7 = vmov 0   ;;  %v29_v9 = vld [vmem:[%s268_s2 + $0x10] sm:$0xf]  ;;  %v164_v46 = vlaneseq }
   0x2   :  { %v191_v3 = vld [vmem:[%s267_s1] sm:$0xff]   ;;  %v63_v5 = vsel %vm61_vm1, %v62_v2, 0  ;;  %11 = vst [vmem:[#allocation2] sm:$0x1] %v10_v4  ;;  %189 = vset.pattern.permute.xlu0 %v200_v7  ;;  %190 = vset.pattern.permute.xlu1 %v200_v7  ;;  %v28_v11 = vld [vmem:[%s268_s2 + $0x8] sm:$0xff]  ;;  %vm149_vm3 = vcmask 1043456  }
   0x3   :  { %v65_v6 = vand.u32 %v63_v5, %v26_v0  ;;  %183 = vmatprep.mubr.msk.bf16.mxu0 %vm53_vm2, %v191_v3  ;;  %v27_v8 = vld [vmem:[%s268_s2] sm:$0xff]  ;;  %v192_v10 = vld [vmem:[%s267_s1 + $0x8] ss:$0 sps:$4 sm:$0x33]   ;;  %42 = vperm.xlu1 %190, %v29_v9   ;;  %v129_v14 = vld [vmem:[%s270_s3 + $0x10] sm:$0xf] }
   0x4   :  { %32 = vperm.xlu0 %189, %v27_v8   ;;  %v127_v12 = vld [vmem:[%s270_s3] sm:$0xff]  ;;  %v128_v13 = vld [vmem:[%s270_s3 + $0x8] sm:$0xff]  ;;  %v165_v49 = vshrl.u32 %v164_v46, 7 }
   0x5   :  { %181 = vmatprep.subr.bf16.mxu0 %v65_v6 }
   0x6   :  { %182 = vmatpush3.bf16.msra.mxu0 %v65_v6  ;;  %v166_v52 = vsub.s32 0, %v165_v49 }
   0x7   :  { %132 = vperm.xlu1 %190, %v127_v12  }
   0x8   :  { %37 = vperm.xlu0 %189, %v28_v11  }
   0x9   :  { %184 = vmatmul.mubr.msk.bf16.vlgmr.msra.gmra.mrb[0].mxu0 %vm53_vm2, %v192_v10  ;;  %v158_v15 = vld [vmem:[#allocation2] sm:$0x1] }
   0xb   :  { %142 = vperm.xlu1 %190, %v129_v14  }
   0xc   :  { %137 = vperm.xlu0 %189, %v128_v13  }
  0x10   :  { %161 = vperm.xlu0 %189, %v158_v15  }
  0x82   :  { %v43_v17 = vpop.permute.xlu1 %42 }
  0x83   :  { %v33_v16 = vpop.permute.xlu0 %32 }
  0x86   :  { %v133_v30 = vpop.permute.xlu1 %132 }
  0x87   :  { %v38_v23 = vpop.permute.xlu0 %37 }
  0x8a   :  { %v143_v39 = vpop.permute.xlu1 %142 }
  0x8b   :  { %v138_v40 = vpop.permute.xlu0 %137 }
  0x8f   :  { %v162_v54 = vpop.permute.xlu0 %161 }
  0x90   :  { %v167_v56 = vrot.slane %v162_v54, %v166_v52 }
  0xdc   :  { %v185_v18 = vpop.f32.mrb[0].mxu0 }
  0xdd   :  { %v110_v19 = vadd.f32 %v185_v18, %v43_v17  ;;  %v101_v20 = vpop.f32.mrb[1].mxu0 }
  0xde   :  { %v102_v21 = vadd.f32 %v101_v20, %v33_v16  ;;  %v186_v22 = vpop.f32.mrb[2].mxu0 }
  0xdf   :  { %v117_v24 = vmul.f32 0.5, %v110_v19  ;;  %v104_v25 = vpop.f32.mrb[3].mxu0 }
  0xe0   :  { %v115_v26 = vmul.f32 0.5, %v102_v21  ;;  %v105_v27 = vadd.f32 %v104_v25, %v38_v23 }
  0xe1   :  { %193 = vtanh.f32 %v117_v24 }
  0xe2   :  { %195 = vtanh.f32 %v115_v26  ;;  %v116_v28 = vmul.f32 0.5, %v105_v27 }
  0xe4   :  { %197 = vtanh.f32 %v116_v28 }
  0xeb   :  { %v194_v29 = vpop.eup %193 }
  0xec   :  { %v196_v31 = vpop.eup %195  ;;  %v123_v32 = vmul.f32 0.5, %v194_v29 }
  0xed   :  { %v121_v33 = vmul.f32 0.5, %v196_v31 }
  0xee   :  { %v198_v34 = vpop.eup %197  ;;  %v126_v35 = vadd.f32 0.5, %v123_v32 }
  0xef   :  { %v124_v36 = vadd.f32 0.5, %v121_v33  ;;  %v122_v37 = vmul.f32 0.5, %v198_v34 }
  0xf0   :  { %v147_v41 = vmul.f32 %v143_v39, %v126_v35 }
  0xf1   :  { %v125_v38 = vadd.f32 0.5, %v122_v37  ;;  %v145_v42 = vmul.f32 %v133_v30, %v124_v36 }
  0xf2   :  { %v150_v45 = vsel %vm149_vm3, %v147_v41, 0.0 }
  0xf3   :  { %v146_v43 = vmul.f32 %v138_v40, %v125_v38 }
  0xf5   :  { %v148_v44 = vadd.f32 %v146_v43, %v145_v42 }
  0xf7   :  { %v151_v47 = vadd.f32 %v150_v45, %v148_v44 }
  0xf9   :  { %v152_v48 = vrot.slane %v151_v47, 4 }
  0xfb   :  { %v153_v50 = vadd.f32 %v152_v48, %v151_v47 }
  0xfd   :  { %v154_v51 = vrot.slane %v153_v50, 2 }
  0xff   :  { %v155_v53 = vadd.f32 %v154_v51, %v153_v50 }
 0x101   :  { %v156_v55 = vrot.slane %v155_v53, 1 }
 0x103   :  { %v157_v57 = vadd.f32 %v156_v55, %v155_v53 }
 0x105   :  { %v168_v58 = vadd.f32 %v167_v56, %v157_v57 }
 0x107   :  { %169 = vst [vmem:[%s271_s5] sm:$0x1] %v168_v58 }

</bundles_post_ra>
